<compile_context>
chip_gen: v6e
topology: v6e:2x2x1
jax: 0.10.0
libtpu: 0.0.40
codegen_flags: <defaults>
</compile_context>

<pallas_src>
import jax
import jax.numpy as jnp
from jax.experimental import pallas as pl
from jax.experimental.pallas import tpu as pltpu


def _round_up(x: int, m: int) -> int:
    return (x + m - 1) // m * m


def _sinusoidal_kernel(t_ref, inv_ref, out_ref):
    # t_ref:   (tile_n, 1)        int32   raw timestamps (cast in-kernel, VPU)
    # inv_ref: (1, half)          float32 same block for every grid step
    # out_ref: (tile_n, 2*half)   float32
    t = t_ref[...].astype(jnp.float32)          # (tile_n, 1)
    phase = t * inv_ref[...]                    # (tile_n, half)  broadcast mul (VPU)
    # One full-width, lane-dense store; sin/cos go to the EUP.
    out_ref[...] = jnp.concatenate([jnp.sin(phase), jnp.cos(phase)], axis=-1)


def sinusoidal_position_embedding(t: jax.Array, time_dim: int, *,
                                  tile_n: int = 1024) -> jax.Array:
    """t: (N,) integer timestamps -> (N, time_dim) float32 embedding."""
    assert time_dim % 2 == 0, "time_dim must be even"
    n = int(t.shape[0])
    half = time_dim // 2

    # Row tile: multiple of 8 (sublane), capped at tile_n and at N itself.
    tile = _round_up(min(tile_n, _round_up(n, 8)), 8)
    n_pad = _round_up(n, tile)
    grid = (n_pad // tile,)

    # Wrapper-side glue: metadata-only reshape; pad ragged tail with zeros.
    t2 = t.astype(jnp.int32).reshape(n, 1)
    if n_pad != n:
        t2 = jnp.pad(t2, ((0, n_pad - n), (0, 0)))

    # inv_freq computed exactly as the PyTorch module does (tiny constant input).
    inv_freq = 1.0 / (10000.0 ** (jnp.arange(0, time_dim, 2, dtype=jnp.float32)
                                  / float(time_dim)))
    inv_freq = inv_freq.reshape(1, half)

    # VMEM budget (double-buffered tiles; the (tile,1) int32 t block is
    # lane-padded to 128 lanes in VMEM).
    t_tile_bytes = tile * 128 * 4
    inv_tile_bytes = 8 * _round_up(half, 128) * 4
    out_tile_bytes = tile * _round_up(time_dim, 128) * 4
    vmem_bytes = 2 * (t_tile_bytes + inv_tile_bytes + out_tile_bytes) + (4 << 20)

    cost = pl.CostEstimate(
        flops=n * half,                       # phase multiplies
        transcendentals=n * time_dim,         # one sin + one cos per half-column
        bytes_accessed=4 * n * (time_dim + 1) + 4 * half,
    )

    out = pl.pallas_call(
        _sinusoidal_kernel,
        out_shape=jax.ShapeDtypeStruct((n_pad, time_dim), jnp.float32),
        grid=grid,
        in_specs=[
            pl.BlockSpec((tile, 1), lambda i: (i, 0)),      # timestamps (int32)
            pl.BlockSpec((1, half), lambda i: (0, 0)),      # inv_freq (constant)
        ],
        out_specs=pl.BlockSpec((tile, time_dim), lambda i: (i, 0)),
        compiler_params=pltpu.CompilerParams(
            dimension_semantics=("parallel",),
            vmem_limit_bytes=int(vmem_bytes),
        ),
        cost_estimate=cost,
    )(t2, inv_freq)

    return out if n_pad == n else out[:n]


def _reference(t: jax.Array, time_dim: int) -> jax.Array:
    tf = t.astype(jnp.float32)[:, None]
    inv_freq = 1.0 / (10000.0 ** (jnp.arange(0, time_dim, 2, dtype=jnp.float32)
                                  / float(time_dim)))
    return jnp.concatenate([jnp.sin(tf * inv_freq), jnp.cos(tf * inv_freq)], axis=-1)


if __name__ == "__main__":
    key = jax.random.PRNGKey(0)
    k0, k1 = jax.random.split(key)

    # Small shape consistent with the module (diffusion-style timestep batch).
    N, TIME_DIM = 8, 32
    t = jax.random.randint(k0, (N,), 0, 1000, dtype=jnp.int32)
    out = jax.block_until_ready(sinusoidal_position_embedding(t, TIME_DIM))
    ref = _reference(t, TIME_DIM)
    assert out.shape == (N, TIME_DIM)
    assert out.dtype == jnp.float32
    assert jnp.allclose(out, ref, atol=1e-5, rtol=1e-5), "mismatch vs reference"

    # Exercise the multi-tile grid + ragged-tail padding path (still small).
    N2, TIME_DIM2 = 300, 64
    t2 = jax.random.randint(k1, (N2,), 0, 1000, dtype=jnp.int32)
    out2 = jax.block_until_ready(
        sinusoidal_position_embedding(t2, TIME_DIM2, tile_n=128))
    ref2 = _reference(t2, TIME_DIM2)
    assert out2.shape == (N2, TIME_DIM2)
    assert jnp.allclose(out2, ref2, atol=1e-5, rtol=1e-5), "mismatch (tiled path)"

    print("KERNEL_OK")
</pallas_src>

<mosaic_0001>
module attributes {stable_mosaic.version = 11 : i64} {
  func.func @_sinusoidal_kernel(%arg0: i32, %arg1: memref<8x1xi32, #tpu.memory_space<vmem>>, %arg2: memref<1x16xf32, #tpu.memory_space<vmem>>, %arg3: memref<8x32xf32, #tpu.memory_space<vmem>>) attributes {dimension_semantics = [#tpu.dimension_semantics<parallel>], iteration_bounds = array<i64: 1>, scalar_prefetch = 0 : i64, scratch_operands = 0 : i64, tpu.core_type = #tpu.core_type<tc>, window_params = [{transform_indices = @transform_0, window_bounds = array<i64: 8, 1>}, {pipeline_mode = #tpu.pipeline_mode<synchronous>, transform_indices = @transform_1, window_bounds = array<i64: 1, 16>}, {transform_indices = @transform_2, window_bounds = array<i64: 8, 32>}]} {
    %c0 = arith.constant 0 : index
    %c0_0 = arith.constant 0 : index
    %0 = vector.load %arg1[%c0, %c0_0] : memref<8x1xi32, #tpu.memory_space<vmem>>, vector<8x1xi32>
    %1 = arith.sitofp %0 : vector<8x1xi32> to vector<8x1xf32>
    %c0_1 = arith.constant 0 : index
    %c0_2 = arith.constant 0 : index
    %2 = vector.load %arg2[%c0_1, %c0_2] : memref<1x16xf32, #tpu.memory_space<vmem>>, vector<1x16xf32>
    %3 = vector.broadcast %1 : vector<8x1xf32> to vector<8x16xf32>
    %4 = vector.broadcast %2 : vector<1x16xf32> to vector<8x16xf32>
    %5 = arith.mulf %3, %4 : vector<8x16xf32>
    %6 = math.sin %5 : vector<8x16xf32>
    %7 = math.cos %5 : vector<8x16xf32>
    %8 = tpu.concatenate %6, %7 in 1 : vector<8x16xf32>, vector<8x16xf32> -> vector<8x32xf32>
    %c0_3 = arith.constant 0 : index
    %c0_4 = arith.constant 0 : index
    %9 = vector.load %arg3[%c0_3, %c0_4] : memref<8x32xf32, #tpu.memory_space<vmem>>, vector<8x32xf32>
    tpu.vector_store %arg3[%c0_3, %c0_4], %8 {strides = array<i32>} : memref<8x32xf32, #tpu.memory_space<vmem>>, vector<8x32xf32>,
    return
  }
  func.func @transform_0(%arg0: i32) -> (i32, i32) {
    %c0_i32 = arith.constant 0 : i32
    %c0_i32_0 = arith.constant 0 : i32
    return %arg0, %c0_i32 : i32, i32
  }
  func.func @transform_1(%arg0: i32) -> (i32, i32) {
    %c0_i32 = arith.constant 0 : i32
    %c0_i32_0 = arith.constant 0 : i32
    %c0_i32_1 = arith.constant 0 : i32
    return %c0_i32, %c0_i32_0 : i32, i32
  }
  func.func @transform_2(%arg0: i32) -> (i32, i32) {
    %c0_i32 = arith.constant 0 : i32
    %c0_i32_0 = arith.constant 0 : i32
    return %arg0, %c0_i32 : i32, i32
  }
}

</mosaic_0001>

<bundles_post_ra>
// kernel: tpu_custom_call.1
= control target key start
LH: loop header
LB: loop body
LE: loop exit
PB: predicated region body
PF: predicated region fallthrough
CT: control target
= control target key end

     0   :  { %v305_v1 = vmov 0   ;;  %s359_s0 = inlined_call_operand.vmem [shape: s32[8,1], index: 0, kind: input, shape index: {}]   ;;  %s360_s1 = inlined_call_operand.vmem [shape: f32[1,16], index: 1, kind: input, shape index: {}]   ;;  %s361_s2 = inlined_call_operand.hbm [shape: f32[8,32], index: 2, kind: output, shape index: {}]  }
   0x1   :  { %v12_v0 = vld [vmem:[%s359_s0] sm:$0xff]  ;;  %278 = vset.pattern.permute.xlu0 %v305_v1 }
   0x2   :  { %v13_v2 = vcvt.s32.f32 %v12_v0 }
   0x3   :  { %7 = vsyncpa [#allocation3], 0  ;;  %v256_v3 = vld [vmem:[%s360_s1] ss:$0 sm:$0xff]  ;;  %v306_v16 = vmov 683565275  }
   0x4   :  { %17 = vperm.xlu0 %278, %v13_v2   ;;  %v307_v18 = vmov 2475754826   ;;  %v308_v21 = vmov 2131351028   ;;  %v309_v24 = vmov 2102212464  }
   0x5   :  { %v310_v27 = vmov 920167782   ;;  %v311_v30 = vmov 1326507024   ;;  %s312_s0 = smov 16   ;;  %s313_s1 = smov [#allocation2]  }
   0x6   :  { %s248_s13 = sshll.u32 %s313_s1, 4  ;;  %s249_s13 = int_to_ptr.vmem [resolvable:$true] %s248_s13 }
   0x7   :  { %s283_s14 = scalar_lea.vmem %s249_s13, 128  ;;  %p288_p1 = scmp.lt.s32.totalorder %s249_s13, %s249_s13 }
   0x8   :  { %p284_p0 = scmp.ne.s32.totalorder %s249_s13, %s283_s14  ;;  %p289_p2 = scmp.lt.s32.totalorder %s283_s14, %s283_s14 }
   0xa   :  { %p290_p3 = por %p289_p2, %p288_p1 }
   0xc   :  { %p291_p4 = pnand %p290_p3, %p284_p0 }
  0x7f   :  { %v18_v4 = vpop.permute.xlu0 %17 }
  0x80   :  { %v335_v5 = vmul.f32 %v256_v3, %v18_v4 }
  0x82   :  { %v30_v6 = vand.u32 2139095040, %v335_v5  ;;  %v27_v10 = vand.u32 2147483647, %v335_v5  ;;  %vm29_vm7 = vcmp.lt.s32.totalorder %v335_v5, 0  ;;  %vm119_vm15 = vweird.f32 %v335_v5 }
  0x84   :  { %v31_v7 = vshrl.u32 %v30_v6, 23  ;;  %v34_v13 = vand.u32 8388607, %v27_v10  ;;  %vm28_vm8 = vcmp.le.f32.partialorder %v27_v10, 0.7853982 }
  0x86   :  { %v257_v8 = vadd.s32 4294967169, %v31_v7  ;;  %v35_v32 = vor.u32 8388608, %v34_v13 }
  0x88   :  { %v37_v9 = vadd.s32 1, %v257_v8  ;;  %v75_v46 = vshll.u32 %v35_v32, 8 }
  0x8a   :  { %vm38_vm0 = vcmp.gt.s32.totalorder %v37_v9, 0 }
  0x8b   :  { %v39_v11 = vsel %vm38_vm0, %v37_v9, 0  ;;  %vm238_vm0 = vcmask 130048  }
  0x8c   :  { %v41_v12 = vand.u32 31, %v39_v11  ;;  %v40_v15 = vshrl.u32 %v39_v11, 5 }
  0x8e   :  { %v42_v14 = vsub.s32 32, %v41_v12  ;;  %v44_v17 = vshll.u32 %v306_v16, %v41_v12  ;;  %v47_v19 = vshll.u32 %v307_v18, %v41_v12  ;;  %v50_v23 = vshll.u32 %v308_v21, %v41_v12 }
  0x8f   :  { %v53_v26 = vshll.u32 %v309_v24, %v41_v12  ;;  %v56_v29 = vshll.u32 %v310_v27, %v41_v12  ;;  %vm59_vm1 = vcmp.lt.s32.totalorder %v40_v15, 1  ;;  %vm62_vm2 = vcmp.lt.s32.totalorder %v40_v15, 4 }
  0x90   :  { %v45_v20 = vshrl.u32 %v307_v18, %v42_v14  ;;  %v48_v22 = vshrl.u32 %v308_v21, %v42_v14  ;;  %v51_v25 = vshrl.u32 %v309_v24, %v42_v14  ;;  %v54_v28 = vshrl.u32 %v310_v27, %v42_v14 }
  0x91   :  { %v57_v31 = vshrl.u32 %v311_v30, %v42_v14  ;;  %v43_v41 = vshrl.u32 %v306_v16, %v42_v14  ;;  %vm61_vm3 = vcmp.lt.s32.totalorder %v40_v15, 3  ;;  %vm60_vm4 = vcmp.lt.s32.totalorder %v40_v15, 2 }
  0x92   :  { %v46_v33 = vor.u32 %v45_v20, %v44_v17  ;;  %v49_v34 = vor.u32 %v48_v22, %v47_v19  ;;  %v52_v35 = vor.u32 %v51_v25, %v50_v23  ;;  %v55_v36 = vor.u32 %v54_v28, %v53_v26 }
  0x93   :  { %v58_v37 = vor.u32 %v57_v31, %v56_v29 }
  0x94   :  { %v64_v38 = vsel %vm62_vm2, %v52_v35, 2102212464  ;;  %v67_v39 = vsel %vm59_vm1, %v46_v33, %v49_v34  ;;  %v71_v40 = vsel %vm59_vm1, %v49_v34, %v52_v35  ;;  %v68_v42 = vsel %vm62_vm2, %v55_v36, 920167782 }
  0x95   :  { %v72_v43 = vsel %vm62_vm2, %v58_v37, 1326507024  ;;  %v69_v44 = vsel %vm61_vm3, %v52_v35, %v68_v42  ;;  %v63_v47 = vsel %vm59_vm1, %v43_v41, %v46_v33  ;;  %v65_v48 = vsel %vm61_vm3, %v49_v34, %v64_v38 }
  0x96   :  { %v73_v45 = vsel %vm61_vm3, %v55_v36, %v72_v43  ;;  %v70_v49 = vsel %vm60_vm4, %v67_v39, %v69_v44  ;;  %v66_v55 = vsel %vm60_vm4, %v63_v47, %v65_v48  ;;  %vm240_vm1 = vcmask 261120  }
  0x97   :  { %v74_v50 = vsel %vm60_vm4, %v71_v40, %v73_v45  ;;  %v344_v53 = vmul.u32.u64.low %v75_v46, %v70_v49  ;;  %v345_v54 = vmul.u32.u64.high %v75_v46, %v70_v49, %v344_v53  ;;  %v82_v57 = vmul.u32 %v75_v46, %v66_v55 }
  0x98   :  { %v341_v51 = vmul.u32.u64.low %v75_v46, %v74_v50  ;;  %v342_v52 = vmul.u32.u64.high %v75_v46, %v74_v50, %v341_v51 }
  0x99   :  { %v85_v56 = vadd.s32 1, %v345_v54 }
  0x9a   :  { %vm84_vm5 = vc.u32 %v342_v52, %v344_v53  ;;  %v83_v6 = vadd.s32 %v344_v53, %v342_v52 }
  0x9b   :  { %v86_v58 = vsel %vm84_vm5, %v85_v56, %v345_v54 }
  0x9c   :  { %v87_v59 = vadd.s32 %v86_v58, %v82_v57 }
  0x9e   :  { %v88_v60 = vadd.s32 536870912, %v87_v59 }
  0xa0   :  { %v89_v61 = vshrl.u32 %v88_v60, 30 }
  0xa2   :  { %v90_v62 = vshll.u32 %v89_v61, 30  ;;  %v113_v20 = vsub.s32 4, %v89_v61 }
  0xa4   :  { %v91_v63 = vsub.s32 %v87_v59, %v90_v62  ;;  %v114_v23 = vsel %vm29_vm7, %v113_v20, %v89_v61 }
  0xa5   :  { %v116_v24 = vsel %vm28_vm8, 0, %v114_v23 }
  0xa6   :  { %v93_v0 = vsub.s32 0, %v91_v63  ;;  %v120_v25 = vadd.s32 3, %v116_v24  ;;  %v224_v27 = vand.u32 3, %v116_v24 }
  0xa8   :  { %v258_v1 = vmin.u32 %v93_v0, %v91_v63  ;;  %v121_v26 = vand.u32 3, %v120_v25  ;;  %vm229_vm10 = vcmp.eq.s32.totalorder %v224_v27, 2  ;;  %vm226_vm12 = vcmp.eq.s32.totalorder %v224_v27, 0 }
  0xa9   :  { %vm225_vm14 = vcmp.lt.s32.totalorder %v224_v27, 2 }
  0xaa   :  { %v95_v2 = vclz %v258_v1  ;;  %vm126_vm9 = vcmp.eq.s32.totalorder %v121_v26, 2  ;;  %vm123_vm11 = vcmp.eq.s32.totalorder %v121_v26, 0  ;;  %vm122_vm13 = vcmp.lt.s32.totalorder %v121_v26, 2 }
  0xac   :  { %v259_v3 = vadd.s32 4294967294, %v95_v2 }
  0xae   :  { %vm260_vm6 = vcmp.lt.s32.totalorder %v259_v3, 0 }
  0xaf   :  { %v98_v4 = vsel %vm260_vm6, 0, %v259_v3 }
  0xb0   :  { %v99_v7 = vsub.s32 32, %v98_v4  ;;  %v103_v8 = vsub.s32 4294967266, %v98_v4  ;;  %v100_v9 = vshll.u32 %v91_v63, %v98_v4 }
  0xb2   :  { %v101_v11 = vshrl.u32 %v83_v6, %v99_v7  ;;  %v104_v12 = vadd.s32 127, %v103_v8 }
  0xb4   :  { %v102_v13 = vor.u32 %v101_v11, %v100_v9  ;;  %v105_v14 = vshll.u32 %v104_v12, 23 }
  0xb6   :  { %v106_v15 = vor.u32 4788187, %v105_v14  ;;  %v109_v17 = vcvt.s32.f32 %v102_v13 }
  0xb8   :  { %v107_v16 = vand.u32 2147483647, %v106_v15 }
  0xba   :  { %v110_v18 = vmul.f32 %v109_v17, %v107_v16 }
  0xbc   :  { %v111_v19 = vxor.u32 2147483648, %v110_v18 }
  0xbe   :  { %v112_v21 = vsel %vm29_vm7, %v111_v19, %v110_v18 }
  0xbf   :  { %v115_v22 = vsel %vm28_vm8, %v335_v5, %v112_v21 }
  0xc0   :  { %279 = vcosq.f32 %v115_v22 }
  0xc1   :  { %281 = vsinq.f32 %v115_v22 }
  0xcd   :  { %v280_v28 = vpop.eup %279 }
  0xce   :  { %v282_v29 = vpop.eup %281  ;;  %v127_v30 = vxor.u32 2147483648, %v280_v28 }
  0xcf   :  { %v124_v31 = vxor.u32 2147483648, %v282_v29 }
  0xd0   :  { %v231_v32 = vsel %vm229_vm10, %v127_v30, %v282_v29  ;;  %v128_v33 = vsel %vm126_vm9, %v127_v30, %v282_v29 }
  0xd1   :  { %v228_v10 = vsel %vm226_vm12, %v280_v28, %v124_v31  ;;  %v125_v34 = vsel %vm123_vm11, %v280_v28, %v124_v31 }
  0xd2   :  { %v232_v35 = vsel %vm225_vm14, %v228_v10, %v231_v32  ;;  %v129_v36 = vsel %vm122_vm13, %v125_v34, %v128_v33 }
  0xd3   :  { %v233_v37 = vsel %vm119_vm15, nan, %v232_v35  ;;  %v130_v38 = vsel %vm119_vm15, nan, %v129_v36 }
  0xd4   :  { %235 = vrot.lane.b32.xlu0 %v233_v37, %s312_s0 }
 0x146   :  { %v236_v39 = vpop.permute.xlu0 %235 }
 0x147   :  { %v239_v40 = vsel %vm238_vm0, %v130_v38, %v236_v39 }
 0x148   :  { %241 = vst.msk [vmem:[#allocation2] sm:$0xff] %vm240_vm1, %v239_v40 }
 0x149   :  { %294 = shalt.err (!%p291_p4)
}
 0x14a   :  { %251 = dma.vmem_to_hbm [thread:$0]  %s249_s13, 128, %s361_s2, [#allocation3]  }
 0x14b   :  { %303 = dma.done.wait [#allocation3], 128  }
 0x14c   :  { %304 = vsyncadd [#allocation3], 4294967168 }
 0x14d   :  { %255 = vsyncpa [#allocation3], 1 }

</bundles_post_ra>
